<compile_context>
chip_gen: v7x
topology: tpu7x:2x2x1
jax: 0.10.0
libtpu: 0.0.40
codegen_flags: <defaults>
</compile_context>

<pallas_src>
import functools

import jax
import jax.numpy as jnp
from jax import lax
from jax.experimental import pallas as pl
from jax.experimental.pallas import tpu as pltpu

_LANES = 128
# Per prediction block budget (before the x2 double-buffering). 4 MiB keeps
# 2 blocks + target well under v5e's 16 MiB scoped-VMEM default and gives
# TSUB=32 (THW=4096 lanes) at C=256/f32, TSUB=64 (THW=8192) for bf16.
_DEFAULT_TILE_BYTES = 4 * 1024 * 1024


def _ce_tile_kernel(pred_ref, tgt_ref, out_ref, *, hw_total, tile_hw, needs_mask):
    """One (batch b, HW-tile h) grid point -> per-lane partial NLL sums."""
    # pred_ref: (1, C, TSUB, 128); tgt_ref: (1, 1, TSUB, 128); out_ref: (1, 1, 1, 128)
    x = pred_ref[0].astype(jnp.float32)            # (C, TSUB, 128)
    t = tgt_ref[0]                                 # (1, TSUB, 128) int32

    # Numerically stable log-softmax over the class axis.  The class axis is
    # the leading dim, so these reductions are elementwise VPU ops across
    # slabs (no cross-lane/sublane XLU work).
    m = jnp.max(x, axis=0, keepdims=True)                                # (1, TSUB, 128)
    lse = jnp.log(jnp.sum(jnp.exp(x - m), axis=0, keepdims=True)) + m    # (1, TSUB, 128)

    # Gather x[target] via select + sum (no int->f32 convert, no extra mul).
    cls_ids = lax.broadcasted_iota(jnp.int32, x.shape, 0)                # (C, TSUB, 128)
    picked = jnp.sum(jnp.where(cls_ids == t, x, 0.0), axis=0, keepdims=True)

    nll = (lse - picked)[0]                                              # (TSUB, 128)

    if needs_mask:  # static; only emitted when HW was padded
        h = pl.program_id(1)
        sub_ids = lax.broadcasted_iota(jnp.int32, nll.shape, 0)
        lane_ids = lax.broadcasted_iota(jnp.int32, nll.shape, 1)
        gpos = h * tile_hw + sub_ids * _LANES + lane_ids
        nll = jnp.where(gpos < hw_total, nll, 0.0)

    # Lane-dense partial sums: reduce only over sublanes here; the cross-lane
    # collapse (and the mean) is done once in the wrapper.
    out_ref[...] = jnp.sum(nll, axis=0, keepdims=True).reshape(1, 1, 1, _LANES)


def heatmap_cross_entropy_loss(predictions, target, *, tile_bytes=_DEFAULT_TILE_BYTES):
    """predictions: [B, C, HW] float (f32 or bf16); target: [B, HW] int -> scalar mean CE."""
    B, C, HW = predictions.shape

    itemsize = jnp.dtype(predictions.dtype).itemsize
    # Native sublane granularity for the input dtype: (8,128) f32, (16,128) bf16, (32,128) 8-bit.
    sub_mult = {4: 8, 2: 16, 1: 32}.get(itemsize, 8)

    n_sub = -(-HW // _LANES)                       # HW rows of 128 lanes (ceil)
    budget_sub = (tile_bytes // (C * _LANES * itemsize)) // sub_mult * sub_mult
    budget_sub = max(sub_mult, budget_sub)

    if n_sub <= budget_sub:
        tsub = n_sub                               # single tile spans full (padded) HW
    else:
        tsub = budget_sub                          # multiple of sub_mult -> legal block

    n_sub_pad = -(-n_sub // tsub) * tsub
    hw_pad = n_sub_pad * _LANES
    n_tiles = n_sub_pad // tsub
    needs_mask = hw_pad != HW

    target = target.astype(jnp.int32)
    if needs_mask:
        predictions = jnp.pad(predictions, ((0, 0), (0, 0), (0, hw_pad - HW)))
        target = jnp.pad(target, ((0, 0), (0, hw_pad - HW)))

    # Pure metadata reshapes (row-major contiguity preserved).
    pred4 = predictions.reshape(B, C, n_sub_pad, _LANES)
    tgt4 = target.reshape(B, 1, n_sub_pad, _LANES)

    kernel = functools.partial(
        _ce_tile_kernel, hw_total=HW, tile_hw=tsub * _LANES, needs_mask=needs_mask
    )

    partials = pl.pallas_call(
        kernel,
        out_shape=jax.ShapeDtypeStruct((B, n_tiles, 1, _LANES), jnp.float32),
        grid_spec=pltpu.PrefetchScalarGridSpec(
            num_scalar_prefetch=0,
            grid=(B, n_tiles),
            in_specs=[
                pl.BlockSpec((1, C, tsub, _LANES), lambda b, h: (b, 0, h, 0)),
                pl.BlockSpec((1, 1, tsub, _LANES), lambda b, h: (b, 0, h, 0)),
            ],
            out_specs=pl.BlockSpec((1, 1, 1, _LANES), lambda b, h: (b, h, 0, 0)),
        ),
        compiler_params=pltpu.CompilerParams(
            # Every grid point owns its output block -> fully parallel grid
            # (lets v7x megacore shard it; harmless on 1-TC v5e/v6e).
            dimension_semantics=("parallel", "parallel"),
        ),
    )(pred4, tgt4)

    return jnp.sum(partials) / (B * HW)


def _reference_loss(predictions, target):
    """Pure-JAX reference matching torch.nn.CrossEntropyLoss semantics."""
    logp = jax.nn.log_softmax(predictions.astype(jnp.float32), axis=1)     # (B, C, HW)
    picked = jnp.take_along_axis(logp, target[:, None, :].astype(jnp.int32), axis=1)
    return -jnp.mean(picked)


if __name__ == "__main__":
    key = jax.random.PRNGKey(0)

    # Case 1: HW multiple of 128, single tile (TrackNet-like toy shape).
    B, C, H, W = 2, 4, 16, 16
    HW = H * W
    k1, k2, k3, k4, k5, k6 = jax.random.split(key, 6)
    pred = jax.random.normal(k1, (B, C, HW), dtype=jnp.float32)
    tgt = jax.random.randint(k2, (B, HW), 0, C, dtype=jnp.int32)
    loss = jax.block_until_ready(heatmap_cross_entropy_loss(pred, tgt))
    ref = jax.block_until_ready(_reference_loss(pred, tgt))
    assert jnp.allclose(loss, ref, rtol=1e-5, atol=1e-5), (loss, ref)

    # Case 2: HW not a multiple of 128 -> exercises padding + masking path.
    HW2 = 200
    pred2 = jax.random.normal(k3, (B, C, HW2), dtype=jnp.float32)
    tgt2 = jax.random.randint(k4, (B, HW2), 0, C, dtype=jnp.int32)
    loss2 = jax.block_until_ready(heatmap_cross_entropy_loss(pred2, tgt2))
    ref2 = jax.block_until_ready(_reference_loss(pred2, tgt2))
    assert jnp.allclose(loss2, ref2, rtol=1e-5, atol=1e-5), (loss2, ref2)

    # Case 3: force a small tile budget -> exercises the multi-tile HW grid axis.
    HW3 = 4096
    pred3 = jax.random.normal(k5, (B, C, HW3), dtype=jnp.float32)
    tgt3 = jax.random.randint(k6, (B, HW3), 0, C, dtype=jnp.int32)
    loss3 = jax.block_until_ready(
        heatmap_cross_entropy_loss(pred3, tgt3, tile_bytes=16 * 1024)
    )
    ref3 = jax.block_until_ready(_reference_loss(pred3, tgt3))
    assert jnp.allclose(loss3, ref3, rtol=1e-5, atol=1e-5), (loss3, ref3)

    print("KERNEL_OK")
</pallas_src>

<mosaic_0001>
module attributes {stable_mosaic.version = 11 : i64} {
  func.func @_ce_tile_kernel(%arg0: i32, %arg1: i32, %arg2: memref<1x4x2x128xf32, #tpu.memory_space<vmem>>, %arg3: memref<1x1x2x128xi32, #tpu.memory_space<vmem>>, %arg4: memref<1x1x1x128xf32, #tpu.memory_space<vmem>>) attributes {dimension_semantics = [#tpu.dimension_semantics<parallel>, #tpu.dimension_semantics<parallel>], iteration_bounds = array<i64: 2, 1>, scalar_prefetch = 0 : i64, scratch_operands = 0 : i64, tpu.core_type = #tpu.core_type<tc>, window_params = [{transform_indices = @transform_0, window_bounds = array<i64: 1, 4, 2, 128>}, {transform_indices = @transform_1, window_bounds = array<i64: 1, 1, 2, 128>}, {transform_indices = @transform_2, window_bounds = array<i64: 1, 1, 1, 128>}]} {
    %c0 = arith.constant 0 : index
    %c0_0 = arith.constant 0 : index
    %c0_1 = arith.constant 0 : index
    %c0_2 = arith.constant 0 : index
    %0 = vector.load %arg2[%c0, %c0_0, %c0_1, %c0_2] : memref<1x4x2x128xf32, #tpu.memory_space<vmem>>, vector<1x4x2x128xf32>
    %1 = vector.shape_cast %0 : vector<1x4x2x128xf32> to vector<4x2x128xf32>
    %c0_3 = arith.constant 0 : index
    %c0_4 = arith.constant 0 : index
    %c0_5 = arith.constant 0 : index
    %c0_6 = arith.constant 0 : index
    %2 = vector.load %arg3[%c0_3, %c0_4, %c0_5, %c0_6] : memref<1x1x2x128xi32, #tpu.memory_space<vmem>>, vector<1x1x2x128xi32>
    %3 = vector.shape_cast %2 : vector<1x1x2x128xi32> to vector<1x2x128xi32>
    %cst = arith.constant dense<0xFF800000> : vector<2x128xf32>
    %4 = vector.multi_reduction <maximumf>, %1, %cst [0] : vector<4x2x128xf32> to vector<2x128xf32>
    %5 = vector.shape_cast %4 : vector<2x128xf32> to vector<1x2x128xf32>
    %6 = vector.broadcast %5 : vector<1x2x128xf32> to vector<4x2x128xf32>
    %7 = arith.subf %1, %6 : vector<4x2x128xf32>
    %8 = math.exp %7 : vector<4x2x128xf32>
    %cst_7 = arith.constant dense<0.000000e+00> : vector<2x128xf32>
    %9 = vector.multi_reduction <add>, %8, %cst_7 [0] : vector<4x2x128xf32> to vector<2x128xf32>
    %10 = vector.shape_cast %9 : vector<2x128xf32> to vector<1x2x128xf32>
    %11 = math.log %10 : vector<1x2x128xf32>
    %12 = arith.addf %11, %5 : vector<1x2x128xf32>
    %13 = tpu.iota {dimensions = array<i32: 0>} : vector<4x2x128xi32>
    %14 = vector.broadcast %3 : vector<1x2x128xi32> to vector<4x2x128xi32>
    %15 = arith.cmpi eq, %13, %14 : vector<4x2x128xi32>
    %cst_8 = arith.constant 0.000000e+00 : f32
    %16 = vector.broadcast %cst_8 : f32 to vector<4x2x128xf32>
    %17 = arith.select %15, %1, %16 : vector<4x2x128xi1>, vector<4x2x128xf32>
    %cst_9 = arith.constant dense<0.000000e+00> : vector<2x128xf32>
    %18 = vector.multi_reduction <add>, %17, %cst_9 [0] : vector<4x2x128xf32> to vector<2x128xf32>
    %19 = vector.shape_cast %18 : vector<2x128xf32> to vector<1x2x128xf32>
    %20 = arith.subf %12, %19 : vector<1x2x128xf32>
    %21 = vector.shape_cast %20 : vector<1x2x128xf32> to vector<2x128xf32>
    %cst_10 = arith.constant dense<0.000000e+00> : vector<128xf32>
    %22 = vector.multi_reduction <add>, %21, %cst_10 [0] : vector<2x128xf32> to vector<128xf32>
    %23 = vector.shape_cast %22 : vector<128xf32> to vector<1x128xf32>
    %24 = vector.shape_cast %23 : vector<1x128xf32> to vector<1x1x1x128xf32>
    %c0_11 = arith.constant 0 : index
    %c0_12 = arith.constant 0 : index
    %c0_13 = arith.constant 0 : index
    %c0_14 = arith.constant 0 : index
    %25 = vector.load %arg4[%c0_11, %c0_12, %c0_13, %c0_14] : memref<1x1x1x128xf32, #tpu.memory_space<vmem>>, vector<1x1x1x128xf32>
    tpu.vector_store %arg4[%c0_11, %c0_12, %c0_13, %c0_14], %24 {strides = array<i32>} : memref<1x1x1x128xf32, #tpu.memory_space<vmem>>, vector<1x1x1x128xf32>,
    return
  }
  func.func @transform_0(%arg0: i32, %arg1: i32) -> (i32, i32, i32, i32) {
    %c0_i32 = arith.constant 0 : i32
    %c0_i32_0 = arith.constant 0 : i32
    %c0_i32_1 = arith.constant 0 : i32
    return %arg0, %c0_i32, %arg1, %c0_i32_0 : i32, i32, i32, i32
  }
  func.func @transform_1(%arg0: i32, %arg1: i32) -> (i32, i32, i32, i32) {
    %c0_i32 = arith.constant 0 : i32
    %c0_i32_0 = arith.constant 0 : i32
    %c0_i32_1 = arith.constant 0 : i32
    return %arg0, %c0_i32, %arg1, %c0_i32_0 : i32, i32, i32, i32
  }
  func.func @transform_2(%arg0: i32, %arg1: i32) -> (i32, i32, i32, i32) {
    %c0_i32 = arith.constant 0 : i32
    %c0_i32_0 = arith.constant 0 : i32
    %c0_i32_1 = arith.constant 0 : i32
    return %arg0, %arg1, %c0_i32, %c0_i32_0 : i32, i32, i32, i32
  }
}

</mosaic_0001>

<bundles_post_ra>
// kernel: tpu_custom_call.1
= control target key start
LH: loop header
LB: loop body
LE: loop exit
PB: predicated region body
PF: predicated region fallthrough
CT: control target
= control target key end

     0   :  { %7 = vsyncpa [#allocation3], 0  ;;  %s884_s0 = inlined_call_operand.hbm [shape: f32[2,4,2,128], index: 0, kind: input, shape index: {}]   ;;  %s885_s1 = inlined_call_operand.hbm [shape: s32[2,1,2,128], index: 1, kind: input, shape index: {}]   ;;  %s886_s2 = inlined_call_operand.hbm [shape: f32[2,1,1,128], index: 2, kind: output, shape index: {}]  }
   0x1   :  { %9 = vsyncpa [#allocation3 + $0x1], 0 }
   0x2   :  { %10 = vsyncpa [#allocation6], 0 }
   0x3   :  { %12 = vsyncpa [#allocation6 + $0x1], 0 }
   0x4   :  { %13 = vsyncpa [#allocation4], 0 }
   0x5   :  { %15 = vsyncpa [#allocation4 + $0x1], 0  ;;  %s655_s9 = smov 0   ;;  %s657_s10 = smov 0  }
   0x6   :  { %s659_s11 = smov 0   ;;  %s661_s12 = smov 0  }
   0x7   :  { %s663_s13 = smov 0   ;;  %s665_s14 = smov 0  }
   0x8 LB: > { %s392_s15 = sadd.s32 4294967295, %s633_s14   ;;  %s393_s16 = sadd.s32 4294967294, %s633_s14   ;;  %s633_s14 = sphi %s665_s14, %s21_s14   ;;  %s629_s13 = sphi %s663_s13, %s905_s13   ;;  %s625_s12 = sphi %s661_s12, %s904_s12   ;;  %s621_s11 = sphi %s659_s11, %s903_s11   ;;  %s617_s10 = sphi %s657_s10, %s902_s10   ;;  %s613_s9 = sphi %s655_s9, %s901_s9  }
   0x9   : > { %s33_s17 = sadd.s32 1, %s629_s13  ;;  %s42_s18 = sadd.s32 1, %s621_s11 }
   0xa   : > { %p35_p0 = scmp.ge.s32.totalorder %s33_s17, 2  ;;  %p49_p1 = scmp.ne.s32.totalorder %s621_s11, %s617_s10 }
   0xb   : > { %p50_p2 = scmp.eq.s32.totalorder %s633_s14, 0  ;;  %p55_p3 = scmp.ne.s32.totalorder %s617_s10, %s613_s9 }
   0xc   : > { %s907_s17 = smov (%p35_p0, %s33_s17), 0  ;;  %p56_p5 = scmp.eq.s32.totalorder %s392_s15, 0 }
   0xd   : > { %p696_p4 = por %p50_p2, %p49_p1  ;;  %s37_s20 = ssub.s32 %s629_s13, %s907_s17 }
   0xe   : > { %p109_p6 = scmp.eq.s32.totalorder %s392_s15, 1  ;;  %p40_p7 = scmp.eq.s32.totalorder %s37_s20, 0 }
   0xf   : > { %p702_p8 = por %p56_p5, %p55_p3  ;;  %p115_p10 = scmp.eq.s32.totalorder %s393_s16, 1 }
  0x10   : > { %p706_p9 = por %p109_p6, %p49_p1  ;;  %p425_p13 = scmp.lt.s32.totalorder %s633_s14, 2 }
  0x11   : > { %s890_s21 = scalar_select %p702_p8, 1, 0 }
  0x12   : > { %s891_s22 = scalar_select %p706_p9, 1, 0 }
  0x13   : > { %s711_s23 = scalar_select %p40_p7, %s621_s11, %s42_s18  }
  0x14   : > { %p713_p11 = por %p115_p10, %p55_p3  ;;  %s720_s25 = sand.u32 1, %s621_s11  }
  0x15   : > { %s396_s26 = sshll.u32 %s720_s25, 3  ;;  %s407_s27 = sshll.u32 %s629_s13, 7 }
  0x16   : > { %s892_s24 = scalar_select %p713_p11, 1, 0 }
  0x17   : > { %s727_s30 = scalar_lea.hbm %s884_s0, %s407_s27  ;;  %s139_s3 = scalar_lea.vmem [#allocation2], %s396_s26 }
  0x18   : > { %s147_s4 = sshll.u32 %s139_s3, 4  ;;  %p733_p0 = pnand %p425_p13, %p696_p4  ;;  %s729_s4 = int_to_ptr.vmem [resolvable:$true] %s147_s4 }
  0x19   : > { %s136_s6 = scalar_lea.sflag [#allocation3], %s720_s25  ;;  %s487_s7 = scalar_lea.hbm %s727_s30, 128 }
  0x1a   : > { %p488_p2 = scmp.ne.s32.totalorder %s727_s30, %s487_s7  ;;  %p489_p3 = pneg %p733_p0 }
  0x1b   : > { %s492_s16 = scalar_lea.hbm %s884_s0, 256  ;;  %p493_p4 = scmp.lt.u32.totalorder %s727_s30, %s884_s0 }
  0x1c   : > { %p490_p5 = pnand %p489_p3, %p488_p2  ;;  %p494_p7 = scmp.lt.u32.totalorder %s492_s16, %s487_s7 }
  0x1d   : > { %p496_p13 = scmp.lt.u32.totalorder %s487_s7, %s727_s30 }
  0x1e   : > { %p491_p6 = pneg %p490_p5  ;;  %p495_p10 = por %p494_p7, %p493_p4 }
  0x20   : > { %p497_p12 = por %p496_p13, %p495_p10 }
  0x22   : > { %p498_p1 = pnand %p497_p12, %p491_p6 }
  0x24   : > { %501 = shalt.err (!%p498_p1)
}
  0x25   : > { %s502_s20 = scalar_lea.vmem %s729_s4, 128  ;;  %s635_s26 = smov [#allocation2]  }
  0x26   : > { %p503_p2 = scmp.ne.s32.totalorder %s729_s4, %s502_s20  ;;  %s507_s27 = sshll.u32 %s635_s26, 4  ;;  %s508_s27 = int_to_ptr.vmem [resolvable:$false] %s507_s27 }
  0x27   : > { %s509_s28 = scalar_lea.vmem %s508_s27, 256  ;;  %p510_p9 = scmp.lt.s32.totalorder %s729_s4, %s508_s27 }
  0x28   : > { %p505_p5 = pnand %p503_p2, %p489_p3  ;;  %p511_p4 = scmp.lt.s32.totalorder %s509_s28, %s502_s20 }
  0x2a   : > { %p506_p11 = pneg %p505_p5  ;;  %p512_p7 = por %p511_p4, %p510_p9 }
  0x2c   : > { %p513_p10 = pnand %p512_p7, %p506_p11 }
  0x2e   : > { %516 = shalt.err (!%p513_p10)
}
  0x2f   : > { %s636_s29 = smov 32   ;;  %s637_s3 = smov 2  }
  0x30   : > { %417 = dma.hbm_to_vmem [thread:$0]  (!%p733_p0), %s727_s30, 128, %s729_s4, %s136_s6, %s636_s29, %s636_s29, %s637_s3  }
  0x31   : > { %p174_p12 = scmp.lt.s32.totalorder %s633_s14, 3  ;;  %s399_s7 = sshll.u32 %s720_s25, 1 }
  0x32   : > { %s400_s8 = sshll.u32 %s629_s13, 5  ;;  %p894_p9 = scmp.ge.s32.totalorder %s633_s14, 1 }
  0x33   : > { %s778_s19 = scalar_lea.hbm %s885_s1, %s400_s8  ;;  %s161_s20 = scalar_lea.vmem [#allocation5], %s399_s7 }
  0x34   : > { %p771_p11 = pnand %p894_p9, %p174_p12  ;;  %s169_s26 = sshll.u32 %s161_s20, 4  ;;  %s170_s26 = int_to_ptr.vmem [resolvable:$true] %s169_s26 }
  0x35   : > { %s158_s30 = scalar_lea.sflag [#allocation6], %s720_s25  ;;  %s517_s4 = scalar_lea.hbm %s778_s19, 32 }
  0x36   : > { %s895_s15 = scalar_select %p771_p11, 1, 0 }
  0x37   : > { %p518_p1 = scmp.ne.s32.totalorder %s778_s19, %s517_s4  ;;  %s522_s28 = scalar_lea.hbm %s885_s1, 64 }
  0x38   : > { %p523_p2 = scmp.lt.u32.totalorder %s778_s19, %s885_s1  ;;  %p524_p5 = scmp.lt.u32.totalorder %s522_s28, %s517_s4 }
  0x39   : > { %p520_p6 = pnand %p518_p1, %p489_p3  ;;  %p526_p7 = scmp.lt.u32.totalorder %s517_s4, %s778_s19 }
  0x3a   : > { %p525_p4 = por %p524_p5, %p523_p2 }
  0x3b   : > { %p521_p13 = pneg %p520_p6 }
  0x3c   : > { %p527_p10 = por %p526_p7, %p525_p4 }
  0x3e   : > { %p528_p12 = pnand %p527_p10, %p521_p13 }
  0x40   : > { %531 = shalt.err (!%p528_p12)
}
  0x41   : > { %s532_s25 = scalar_lea.vmem %s170_s26, 32  ;;  %s638_s7 = smov [#allocation5]  }
  0x42   : > { %p533_p9 = scmp.ne.s32.totalorder %s170_s26, %s532_s25  ;;  %s537_s8 = sshll.u32 %s638_s7, 4  ;;  %s538_s8 = int_to_ptr.vmem [resolvable:$false] %s537_s8 }
  0x43   : > { %s539_s16 = scalar_lea.vmem %s538_s8, 64  ;;  %p540_p8 = scmp.lt.s32.totalorder %s170_s26, %s538_s8 }
  0x44   : > { %p535_p1 = pnand %p533_p9, %p489_p3  ;;  %p541_p11 = scmp.lt.s32.totalorder %s539_s16, %s532_s25 }
  0x46   : > { %p536_p6 = pneg %p535_p1  ;;  %p542_p2 = por %p541_p11, %p540_p8 }
  0x48   : > { %p543_p5 = pnand %p542_p2, %p536_p6 }
  0x4a   : > { %546 = shalt.err (!%p543_p5)
}
  0x4b   : > { %420 = dma.hbm_to_vmem [thread:$0]  (!%p733_p0), %s778_s19, 32, %s170_s26, %s158_s30  }
  0x4c   : > { %p896_p13 = scmp.ne.s32.totalorder %s895_s15, 0 }
  0x4d   : > { %s803_s18 = sand.u32 (!%p896_p13), 1, %s617_s10   ;;  %p897_p3 = scmp.ne.s32.totalorder (!%p896_p13), %s890_s21, 0 }
  0x4e   : > { %178 = sbr.rel (%p896_p13) target bundleno = 163 (0xa3), region = 28  ;;  %s402_s20 = sshll.u32 (!%p896_p13), %s803_s18, 3 }
  0x4f   : > { %s181_s4 = scalar_lea.sflag (!%p896_p13), [#allocation3], %s803_s18  ;;  %s184_s6 = scalar_lea.vmem (!%p896_p13), [#allocation2], %s402_s20 }
  0x55   : > { %600 = dma.done.wait (%p897_p3), %s181_s4, 128  }
  0x56   : > { %602 = vsyncadd (%p897_p3), %s181_s4, 4294967168  ;;  %s403_s5 = sshll.u32 %s803_s18, 1  ;;  %s190_s15 = scalar_lea.sflag [#allocation6], %s803_s18 }
  0x57   : > { %s193_s19 = scalar_lea.vmem [#allocation5], %s403_s5 }
  0x58   : > { %604 = dma.done.wait (%p897_p3), %s190_s15, 32  }
  0x59   : > { %606 = vsyncadd (%p897_p3), %s190_s15, 4294967264  ;;  %vm223_vm0 = vcmask 1041408   ;;  %v218_v0 = vld [vmem:[%s184_s6] sm:$0x3]  ;;  %v219_v1 = vld [vmem:[%s184_s6 + $0x2] sm:$0x3] }
  0x5a   : > { %v220_v2 = vld [vmem:[%s184_s6 + $0x4] sm:$0x3]  ;;  %v221_v3 = vld [vmem:[%s184_s6 + $0x6] sm:$0x3]  ;;  %v224_v4 = vsel %vm223_vm0, %v218_v0, -inf  ;;  %v225_v5 = vsel %vm223_vm0, %v219_v1, -inf }
  0x5b   : > { %v226_v6 = vsel %vm223_vm0, %v220_v2, -inf  ;;  %v227_v7 = vsel %vm223_vm0, %v221_v3, -inf  ;;  %v228_v8 = vmax.f32 %v224_v4, %v225_v5  ;;  %v222_v20 = vld [vmem:[%s193_s19] sm:$0x3]  ;;  %s217_s21 = scalar_lea.vmem [#allocation7], %s803_s18  ;;  %s404_s30 = sshll.u32 %s625_s12, 4 }
  0x5c   : > { %v229_v9 = vmax.f32 %v226_v6, %v227_v7  ;;  %vm253_vm1 = vcmp.eq.s32.totalorder %v222_v20, 0  ;;  %vm254_vm2 = vcmp.eq.s32.totalorder %v222_v20, 1  ;;  %vm255_vm3 = vcmp.eq.s32.totalorder %v222_v20, 2  ;;  %s291_s26 = sshll.u32 %s217_s21, 4  ;;  %s837_s29 = scalar_lea.hbm %s886_s2, %s404_s30  ;;  %s832_s26 = int_to_ptr.vmem [resolvable:$true] %s291_s26 }
  0x5d   : > { %v257_v30 = vsel %vm253_vm1, %v218_v0, 0.0  ;;  %v258_v31 = vsel %vm254_vm2, %v219_v1, 0.0  ;;  %v259_v35 = vsel %vm255_vm3, %v220_v2, 0.0  ;;  %vm256_vm4 = vcmp.eq.s32.totalorder %v222_v20, 3  ;;  %s278_s3 = scalar_lea.sflag [#allocation4], %s803_s18  ;;  %s547_s25 = scalar_lea.vmem %s832_s26, 16 }
  0x5e   : > { %v230_v10 = vmax.f32 %v228_v8, %v229_v9  ;;  %v261_v33 = vsel %vm223_vm0, %v257_v30, 0.0  ;;  %v262_v34 = vsel %vm223_vm0, %v258_v31, 0.0  ;;  %v264_v37 = vsel %vm223_vm0, %v259_v35, 0.0  ;;  %p548_p8 = scmp.ne.s32.totalorder %s832_s26, %s547_s25  ;;  %p898_p0 = scmp.ne.s32.totalorder %s891_s22, 0 }
  0x5f   : > { %v263_v36 = vadd.f32 %v262_v34, %v261_v33  ;;  %v260_v38 = vsel %vm256_vm4, %v221_v3, 0.0  ;;  %s639_s12 = smov [#allocation7]  }
  0x60   : > { %v231_v11 = vsub.f32 %v218_v0, %v230_v10  ;;  %v232_v12 = vsub.f32 %v219_v1, %v230_v10  ;;  %v233_v13 = vsub.f32 %v220_v2, %v230_v10  ;;  %v234_v14 = vsub.f32 %v221_v3, %v230_v10  ;;  %p549_p11 = pnand %p548_p8, %p898_p0  ;;  %s551_s7 = sshll.u32 %s639_s12, 4  ;;  %s552_s7 = int_to_ptr.vmem [resolvable:$false] %s551_s7 }
  0x61   : > { %v265_v39 = vadd.f32 %v264_v37, %v263_v36  ;;  %v266_v40 = vsel %vm223_vm0, %v260_v38, 0.0  ;;  %s553_s8 = scalar_lea.vmem %s552_s7, 32  ;;  %p554_p7 = scmp.lt.s32.totalorder %s832_s26, %s552_s7 }
  0x62   : > { %v235_v15 = vmul.f32 1.442695, %v231_v11  ;;  %v237_v16 = vmul.f32 1.442695, %v232_v12  ;;  %v239_v17 = vmul.f32 1.442695, %v233_v13  ;;  %p550_p4 = pneg %p549_p11  ;;  %p555_p10 = scmp.lt.s32.totalorder %s553_s8, %s547_s25 }
  0x63   : > { %v241_v18 = vmul.f32 1.442695, %v234_v14  ;;  %v267_v43 = vadd.f32 %v266_v40, %v265_v39 }
  0x64   : > { %477 = vpow2.f32 %v235_v15  ;;  %p556_p12 = por %p555_p10, %p554_p7 }
  0x65   : > { %479 = vpow2.f32 %v237_v16 }
  0x66   : > { %481 = vpow2.f32 %v239_v17  ;;  %p557_p9 = pnand %p556_p12, %p550_p4 }
  0x67   : > { %483 = vpow2.f32 %v241_v18 }
  0x6e   : > { %v478_v19 = vpop.eup %477 }
  0x6f   : > { %v480_v21 = vpop.eup %479  ;;  %v243_v22 = vsel %vm223_vm0, %v478_v19, 0.0 }
  0x70   : > { %v482_v23 = vpop.eup %481  ;;  %v244_v24 = vsel %vm223_vm0, %v480_v21, 0.0 }
  0x71   : > { %v484_v25 = vpop.eup %483  ;;  %v245_v26 = vadd.f32 %v244_v24, %v243_v22  ;;  %v246_v27 = vsel %vm223_vm0, %v482_v23, 0.0 }
  0x72   : > { %v248_v28 = vsel %vm223_vm0, %v484_v25, 0.0 }
  0x73   : > { %v247_v29 = vadd.f32 %v246_v27, %v245_v26 }
  0x75   : > { %v249_v32 = vadd.f32 %v248_v28, %v247_v29 }
  0x77   : > { %485 = vlog2.f32 %v249_v32 }
  0x81   : > { %v486_v41 = vpop.eup %485 }
  0x82   : > { %v251_v42 = vmul.f32 0.6931472, %v486_v41 }
  0x84   : > { %v252_v44 = vadd.f32 %v251_v42, %v230_v10 }
  0x86   : > { %v268_v45 = vsub.f32 %v252_v44, %v267_v43 }
  0x88   : > { %v269_v46 = vsel %vm223_vm0, %v268_v45, 0.0 }
  0x89   : > { %v270_v47 = vrot.slane %v269_v46, 4 }
  0x8b   : > { %v271_v48 = vadd.f32 %v270_v47, %v269_v46 }
  0x8d   : > { %v272_v49 = vrot.slane %v271_v48, 2 }
  0x8f   : > { %v273_v50 = vadd.f32 %v272_v49, %v271_v48 }
  0x91   : > { %v274_v51 = vrot.slane %v273_v50, 1 }
  0x93   : > { %v275_v52 = vadd.f32 %v274_v51, %v273_v50 }
  0x95   : > { %276 = vst [vmem:[%s217_s21] sm:$0x1] %v275_v52 }
  0x96   : > { %560 = shalt.err (!%p557_p9)
}
  0x97   : > { %s561_s16 = scalar_lea.hbm %s837_s29, 16  ;;  %s565_s4 = scalar_lea.hbm %s886_s2, 32 }
  0x98   : > { %p562_p1 = scmp.ne.s32.totalorder %s837_s29, %s561_s16  ;;  %p566_p5 = scmp.lt.u32.totalorder %s837_s29, %s886_s2 }
  0x99   : > { %p567_p13 = scmp.lt.u32.totalorder %s565_s4, %s561_s16  ;;  %p569_p8 = scmp.lt.u32.totalorder %s561_s16, %s837_s29 }
  0x9a   : > { %p563_p6 = pnand %p562_p1, %p898_p0 }
  0x9b   : > { %p568_p3 = por %p567_p13, %p566_p5 }
  0x9c   : > { %p564_p2 = pneg %p563_p6 }
  0x9d   : > { %p570_p11 = por %p569_p8, %p568_p3 }
  0x9f   : > { %p571_p4 = pnand %p570_p11, %p564_p2 }
  0xa1   : > { %574 = shalt.err (!%p571_p4)
}
  0xa2   : > { %412 = dma.vmem_to_hbm [thread:$0]  (%p898_p0), %s832_s26, 16, %s837_s29, %s278_s3  }
  0xa3 PF: > { %s303_s15 = sand.u32 1, %s613_s9   ;;  %p899_p7 = scmp.ne.s32.totalorder %s892_s24, 0 }
  0xa4   : > { %p900_p10 = scmp.ge.s32.totalorder %s633_s14, 2  ;;  %s304_s19 = scalar_lea.sflag [#allocation4], %s303_s15 }
  0xa6   : > { %p422_p12 = pnand %p900_p10, %p899_p7 }
  0xa8   : > { %608 = dma.done.wait (!%p422_p12), %s304_s19, 16  }
  0xa9   : > { %610 = vsyncadd (!%p422_p12), %s304_s19, 4294967280  ;;  %s21_s14 = sadd.s32 1, %s633_s14   ;;  %s901_s9 = smov %s617_s10 }
  0xaa   : > { %p18_p9 = scmp.ge.s32.totalorder %s21_s14, 4   ;;  %s902_s10 = smov %s621_s11 }
  0xab   : > { %s903_s11 = smov %s711_s23  ;;  %s904_s12 = smov %s629_s13 }
  0xac   : > { %s905_s13 = smov %s907_s17  ;;  %20 = sbr.rel (!%p18_p9) target bundleno = 8 (0x8), region = 86 }
  0xb3   :  { %308 = vsyncpa [#allocation3], 1 }
  0xb4   :  { %310 = vsyncpa [#allocation3 + $0x1], 1 }
  0xb5   :  { %311 = vsyncpa [#allocation6], 1 }
  0xb6   :  { %313 = vsyncpa [#allocation6 + $0x1], 1 }
  0xb7   :  { %314 = vsyncpa [#allocation4], 1 }
  0xb8   :  { %316 = vsyncpa [#allocation4 + $0x1], 1 }

</bundles_post_ra>
